<compile_context>
chip_gen: v7x
topology: tpu7x:2x2x1
jax: 0.10.0
libtpu: 0.0.40
codegen_flags: <defaults>
</compile_context>

<pallas_src>
import functools

import jax
import jax.numpy as jnp
from jax import lax
from jax.experimental import pallas as pl
from jax.experimental.pallas import tpu as pltpu

EPS = 1e-5
LANE = 128
VMEM_LIMIT = 48 * 1024 * 1024   # explicit scoped-VMEM cap (fits v7x's 64 MiB physical)


def _round_up(x, m):
    return (x + m - 1) // m * m


def _pick_tile_m(m, target):
    """Largest divisor of m that is a multiple of 8 and <= target (fallback: m)."""
    t = min(target, m)
    while t >= 8:
        if m % t == 0 and t % 8 == 0:
            return t
        t -= 1
    return m


# --------------------------------------------------------------------------- #
# Kernels
# --------------------------------------------------------------------------- #
def _matmul_stats_kernel(apply_pre_act, x_ref, w_ref, *rest):
    """y = (relu(x*a + c) if apply_pre_act else x) @ w  +  per-tile BN partials."""
    if apply_pre_act:
        a_ref, c_ref, y_ref, st_ref = rest
    else:
        a_ref = c_ref = None
        y_ref, st_ref = rest

    x = x_ref[...]                                           # (TM, Cin_p) f32
    if apply_pre_act:
        x = jnp.maximum(x * a_ref[...] + c_ref[...], 0.0)    # BN-apply + ReLU in f32
    y = jnp.dot(x.astype(jnp.bfloat16), w_ref[...],
                preferred_element_type=jnp.float32)          # (TM, Cout_p) on MXU
    y_ref[...] = y

    cols = y.shape[1]
    s1 = jnp.sum(y, axis=0, keepdims=True)                   # per-channel sum
    s2 = jnp.sum(y * y, axis=0, keepdims=True)               # per-channel sum of squares
    st_ref[0] = jnp.concatenate(
        [s1, s2, jnp.zeros((6, cols), jnp.float32)], axis=0)


def _conv2_im2col_kernel(H, W, C, y1_ref, w2_ref, a_ref, c_ref,
                         y2_ref, st_ref, buf_ref):
    """Per-image: BN1-apply + ReLU, zero-halo im2col, single 3x3 conv matmul."""
    # BN1 apply + ReLU in f32, cast once to bf16 for the MXU.
    h1 = jnp.maximum(y1_ref[0] * a_ref[...] + c_ref[...], 0.0).astype(jnp.bfloat16)

    # Zero only the halo border; the interior is fully overwritten below.
    buf_ref[0:1, :, :] = jnp.zeros((1, W + 2, C), jnp.bfloat16)
    buf_ref[H + 1:H + 2, :, :] = jnp.zeros((1, W + 2, C), jnp.bfloat16)
    buf_ref[1:H + 1, 0:1, :] = jnp.zeros((H, 1, C), jnp.bfloat16)
    buf_ref[1:H + 1, W + 1:W + 2, :] = jnp.zeros((H, 1, C), jnp.bfloat16)
    buf_ref[1:H + 1, 1:W + 1, :] = h1.reshape(H, W, C)

    # im2col: 9 statically shifted windows -> one (H*W, 9*C) tile -> one MXU matmul.
    wins = []
    for dy in range(3):
        for dx in range(3):
            wins.append(buf_ref[dy:dy + H, dx:dx + W, :])    # (H, W, C) bf16
    patch = jnp.concatenate(wins, axis=2).reshape(H * W, 9 * C)
    y2 = jnp.dot(patch, w2_ref[...], preferred_element_type=jnp.float32)
    y2_ref[0] = y2

    s1 = jnp.sum(y2, axis=0, keepdims=True)
    s2 = jnp.sum(y2 * y2, axis=0, keepdims=True)
    st_ref[0] = jnp.concatenate(
        [s1, s2, jnp.zeros((6, C), jnp.float32)], axis=0)


def _bn_add_relu_kernel(y_ref, x_ref, a_ref, c_ref, o_ref):
    """out = relu(bn3(y3) + identity), all f32."""
    o_ref[...] = jnp.maximum(y_ref[...] * a_ref[...] + c_ref[...] + x_ref[...], 0.0)


# --------------------------------------------------------------------------- #
# Wrapper
# --------------------------------------------------------------------------- #
def _bn_affine(part, count, gamma, beta):
    """Fold global BN stats (from per-tile partial sums) into scale/shift."""
    s = jnp.sum(part[:, 0, :], axis=0)
    sq = jnp.sum(part[:, 1, :], axis=0)
    mean = s / count
    var = jnp.maximum(sq / count - mean * mean, 0.0)          # biased variance
    a = gamma * lax.rsqrt(var + EPS)
    c = beta - mean * a
    return a.reshape(1, -1), c.reshape(1, -1)


def bottleneck_forward(x_nchw, conv1_w, conv2_w, conv3_w,
                       g1, b1, g2, b2, g3, b3, *, tile_m=1024):
    N, Cin, H, W = x_nchw.shape
    Cmid = conv1_w.shape[0]
    Cout = conv3_w.shape[0]
    assert Cin == Cout, "identity add requires in_channels == out_channels * expansion"
    # TODO(synk): stride>1 and the optional downsample branch are not implemented.

    M, HW = N * H * W, H * W
    Ci = _round_up(Cin, LANE)     # lane-padded channel counts
    Cm = _round_up(Cmid, LANE)
    Co = _round_up(Cout, LANE)
    assert Ci == Co
    TM = _pick_tile_m(M, tile_m)
    nt = M // TM

    f32, bf16 = jnp.float32, jnp.bfloat16

    # ---- NCHW -> rows=(N,H,W) flattened, cols = channels, lane-padded ----------
    x_flat = jnp.transpose(x_nchw, (0, 2, 3, 1)).reshape(M, Cin).astype(f32)
    x_flat = jnp.pad(x_flat, ((0, 0), (0, Ci - Cin)))

    # conv weights (PyTorch OIHW) -> lane-padded matmul layouts, bf16 for the MXU.
    w1 = jnp.pad(conv1_w[:, :, 0, 0].T, ((0, Ci - Cin), (0, Cm - Cmid))).astype(bf16)
    w2 = jnp.transpose(conv2_w, (2, 3, 1, 0))                               # (3,3,I,O)
    w2 = jnp.pad(w2, ((0, 0), (0, 0), (0, Cm - Cmid), (0, Cm - Cmid)))
    w2 = w2.reshape(9 * Cm, Cm).astype(bf16)
    w3 = jnp.pad(conv3_w[:, :, 0, 0].T, ((0, Cm - Cmid), (0, Co - Cout))).astype(bf16)

    def pad_vec(v, c):
        return jnp.pad(v.astype(f32), (0, c - v.shape[0]))

    g1p, b1p = pad_vec(g1, Cm), pad_vec(b1, Cm)
    g2p, b2p = pad_vec(g2, Cm), pad_vec(b2, Cm)
    g3p, b3p = pad_vec(g3, Co), pad_vec(b3, Co)

    params = pltpu.CompilerParams(dimension_semantics=("parallel",),
                                  vmem_limit_bytes=VMEM_LIMIT)

    # ---- pass 1: conv1 (1x1) + BN1 partial stats, tiled over M ------------------
    y1, p1 = pl.pallas_call(
        functools.partial(_matmul_stats_kernel, False),
        out_shape=(jax.ShapeDtypeStruct((M, Cm), f32),
                   jax.ShapeDtypeStruct((nt, 8, Cm), f32)),
        grid=(nt,),
        in_specs=[pl.BlockSpec((TM, Ci), lambda i: (i, 0)),
                  pl.BlockSpec((Ci, Cm), lambda i: (0, 0))],
        out_specs=(pl.BlockSpec((TM, Cm), lambda i: (i, 0)),
                   pl.BlockSpec((1, 8, Cm), lambda i: (i, 0, 0))),
        compiler_params=params,
    )(x_flat, w1)
    a1, c1 = _bn_affine(p1, M, g1p, b1p)

    # ---- pass 2: BN1-apply + ReLU + conv2 (3x3 im2col) + BN2 partial stats ------
    y1_img = y1.reshape(N, HW, Cm)
    y2, p2 = pl.pallas_call(
        functools.partial(_conv2_im2col_kernel, H, W, Cm),
        out_shape=(jax.ShapeDtypeStruct((N, HW, Cm), f32),
                   jax.ShapeDtypeStruct((N, 8, Cm), f32)),
        grid=(N,),
        in_specs=[pl.BlockSpec((1, HW, Cm), lambda n: (n, 0, 0)),
                  pl.BlockSpec((9 * Cm, Cm), lambda n: (0, 0)),
                  pl.BlockSpec((1, Cm), lambda n: (0, 0)),
                  pl.BlockSpec((1, Cm), lambda n: (0, 0))],
        out_specs=(pl.BlockSpec((1, HW, Cm), lambda n: (n, 0, 0)),
                   pl.BlockSpec((1, 8, Cm), lambda n: (n, 0, 0))),
        scratch_shapes=[pltpu.VMEM((H + 2, W + 2, Cm), bf16)],
        compiler_params=params,
    )(y1_img, w2, a1, c1)
    a2, c2 = _bn_affine(p2, M, g2p, b2p)

    # ---- pass 3: BN2-apply + ReLU + conv3 (1x1) + BN3 partial stats -------------
    y3, p3 = pl.pallas_call(
        functools.partial(_matmul_stats_kernel, True),
        out_shape=(jax.ShapeDtypeStruct((M, Co), f32),
                   jax.ShapeDtypeStruct((nt, 8, Co), f32)),
        grid=(nt,),
        in_specs=[pl.BlockSpec((TM, Cm), lambda i: (i, 0)),
                  pl.BlockSpec((Cm, Co), lambda i: (0, 0)),
                  pl.BlockSpec((1, Cm), lambda i: (0, 0)),
                  pl.BlockSpec((1, Cm), lambda i: (0, 0))],
        out_specs=(pl.BlockSpec((TM, Co), lambda i: (i, 0)),
                   pl.BlockSpec((1, 8, Co), lambda i: (i, 0, 0))),
        compiler_params=params,
    )(y2.reshape(M, Cm), w3, a2, c2)
    a3, c3 = _bn_affine(p3, M, g3p, b3p)

    # ---- pass 4: BN3-apply + identity add + ReLU --------------------------------
    out = pl.pallas_call(
        _bn_add_relu_kernel,
        out_shape=jax.ShapeDtypeStruct((M, Co), f32),
        grid=(nt,),
        in_specs=[pl.BlockSpec((TM, Co), lambda i: (i, 0)),
                  pl.BlockSpec((TM, Co), lambda i: (i, 0)),
                  pl.BlockSpec((1, Co), lambda i: (0, 0)),
                  pl.BlockSpec((1, Co), lambda i: (0, 0))],
        out_specs=pl.BlockSpec((TM, Co), lambda i: (i, 0)),
        compiler_params=params,
    )(y3, x_flat, a3, c3)

    return out[:, :Cout].reshape(N, H, W, Cout).transpose(0, 3, 1, 2)   # back to NCHW


# --------------------------------------------------------------------------- #
# Pure-JAX reference (NCHW, training-mode BN, f32 / HIGHEST precision)
# --------------------------------------------------------------------------- #
def bottleneck_reference(x, conv1_w, conv2_w, conv3_w, g1, b1, g2, b2, g3, b3):
    dn = ("NCHW", "OIHW", "NCHW")
    prec = lax.Precision.HIGHEST

    def bn(y, g, b):
        mean = jnp.mean(y, axis=(0, 2, 3), keepdims=True)
        var = jnp.mean(jnp.square(y - mean), axis=(0, 2, 3), keepdims=True)
        return ((y - mean) * lax.rsqrt(var + EPS) * g.reshape(1, -1, 1, 1)
                + b.reshape(1, -1, 1, 1))

    h = lax.conv_general_dilated(x, conv1_w, (1, 1), "VALID",
                                 dimension_numbers=dn, precision=prec)
    h = jnp.maximum(bn(h, g1, b1), 0.0)
    h = lax.conv_general_dilated(h, conv2_w, (1, 1), ((1, 1), (1, 1)),
                                 dimension_numbers=dn, precision=prec)
    h = jnp.maximum(bn(h, g2, b2), 0.0)
    h = lax.conv_general_dilated(h, conv3_w, (1, 1), "VALID",
                                 dimension_numbers=dn, precision=prec)
    h = bn(h, g3, b3) + x
    return jnp.maximum(h, 0.0)


if __name__ == "__main__":
    N, Cin, H, W = 2, 16, 16, 16     # NCHW input like the PyTorch module
    Cmid = 4                         # out_channels
    Cout = Cmid * 4                  # expansion = 4 (== Cin so identity add is valid)

    key = jax.random.PRNGKey(0)
    ks = jax.random.split(key, 10)
    x = jax.random.normal(ks[0], (N, Cin, H, W), jnp.float32)
    conv1_w = 0.2 * jax.random.normal(ks[1], (Cmid, Cin, 1, 1), jnp.float32)
    conv2_w = 0.2 * jax.random.normal(ks[2], (Cmid, Cmid, 3, 3), jnp.float32)
    conv3_w = 0.2 * jax.random.normal(ks[3], (Cout, Cmid, 1, 1), jnp.float32)
    g1 = 1.0 + 0.1 * jax.random.normal(ks[4], (Cmid,), jnp.float32)
    b1 = 0.1 * jax.random.normal(ks[5], (Cmid,), jnp.float32)
    g2 = 1.0 + 0.1 * jax.random.normal(ks[6], (Cmid,), jnp.float32)
    b2 = 0.1 * jax.random.normal(ks[7], (Cmid,), jnp.float32)
    g3 = 1.0 + 0.1 * jax.random.normal(ks[8], (Cout,), jnp.float32)
    b3 = 0.1 * jax.random.normal(ks[9], (Cout,), jnp.float32)

    # tile_m=128 -> 4 row-tiles: exercises cross-tile BN statistics + pipelining.
    out = bottleneck_forward(x, conv1_w, conv2_w, conv3_w,
                             g1, b1, g2, b2, g3, b3, tile_m=128)
    out = jax.block_until_ready(out)

    ref = bottleneck_reference(x, conv1_w, conv2_w, conv3_w, g1, b1, g2, b2, g3, b3)
    err = float(jnp.max(jnp.abs(out - ref)))
    # bf16 matmul inputs through three stacked conv+BN stages vs an f32 reference:
    # allow ~4% of the output dynamic range.
    tol = 4e-2 * (1.0 + float(jnp.max(jnp.abs(ref))))
    if not (out.shape == (N, Cout, H, W) and err < tol):
        raise RuntimeError(f"mismatch vs reference: max abs err = {err} (tol {tol})")
    print("KERNEL_OK")
</pallas_src>

<mosaic_0001>
module attributes {stable_mosaic.version = 11 : i64} {
  func.func @_matmul_stats_kernel(%arg0: i32, %arg1: memref<128x128xf32, #tpu.memory_space<vmem>>, %arg2: memref<128x128xbf16, #tpu.memory_space<vmem>>, %arg3: memref<128x128xf32, #tpu.memory_space<vmem>>, %arg4: memref<1x8x128xf32, #tpu.memory_space<vmem>>) attributes {dimension_semantics = [#tpu.dimension_semantics<parallel>], iteration_bounds = array<i64: 4>, scalar_prefetch = 0 : i64, scratch_operands = 0 : i64, tpu.core_type = #tpu.core_type<tc>, window_params = [{transform_indices = @transform_0, window_bounds = array<i64: 128, 128>}, {pipeline_mode = #tpu.pipeline_mode<synchronous>, transform_indices = @transform_1, window_bounds = array<i64: 128, 128>}, {transform_indices = @transform_2, window_bounds = array<i64: 128, 128>}, {transform_indices = @transform_3, window_bounds = array<i64: 1, 8, 128>}]} {
    %c0 = arith.constant 0 : index
    %c0_0 = arith.constant 0 : index
    %0 = vector.load %arg1[%c0, %c0_0] : memref<128x128xf32, #tpu.memory_space<vmem>>, vector<128x128xf32>
    %1 = arith.truncf %0 : vector<128x128xf32> to vector<128x128xbf16>
    %c0_1 = arith.constant 0 : index
    %c0_2 = arith.constant 0 : index
    %2 = vector.load %arg2[%c0_1, %c0_2] : memref<128x128xbf16, #tpu.memory_space<vmem>>, vector<128x128xbf16>
    %cst = arith.constant dense<0.000000e+00> : vector<128x128xf32>
    %3 = tpu.matmul %1, %2, %cst {dimension_numbers = #tpu.dot_dimension_numbers<[1], [0], [0], [1], [0, 0, 1, 1], [], []>} : vector<128x128xbf16>, vector<128x128xbf16>, vector<128x128xf32> -> vector<128x128xf32>
    %c0_3 = arith.constant 0 : index
    %c0_4 = arith.constant 0 : index
    %4 = vector.load %arg3[%c0_3, %c0_4] : memref<128x128xf32, #tpu.memory_space<vmem>>, vector<128x128xf32>
    tpu.vector_store %arg3[%c0_3, %c0_4], %3 {strides = array<i32>} : memref<128x128xf32, #tpu.memory_space<vmem>>, vector<128x128xf32>,
    %cst_5 = arith.constant dense<0.000000e+00> : vector<128xf32>
    %5 = vector.multi_reduction <add>, %3, %cst_5 [0] : vector<128x128xf32> to vector<128xf32>
    %6 = vector.shape_cast %5 : vector<128xf32> to vector<1x128xf32>
    %7 = arith.mulf %3, %3 : vector<128x128xf32>
    %cst_6 = arith.constant dense<0.000000e+00> : vector<128xf32>
    %8 = vector.multi_reduction <add>, %7, %cst_6 [0] : vector<128x128xf32> to vector<128xf32>
    %9 = vector.shape_cast %8 : vector<128xf32> to vector<1x128xf32>
    %cst_7 = arith.constant 0.000000e+00 : f32
    %10 = vector.broadcast %cst_7 : f32 to vector<6x128xf32>
    %11 = tpu.concatenate %6, %9, %10 in 0 : vector<1x128xf32>, vector<1x128xf32>, vector<6x128xf32> -> vector<8x128xf32>
    %c0_8 = arith.constant 0 : index
    %c0_9 = arith.constant 0 : index
    %c0_10 = arith.constant 0 : index
    %12 = vector.load %arg4[%c0_8, %c0_9, %c0_10] : memref<1x8x128xf32, #tpu.memory_space<vmem>>, vector<1x8x128xf32>
    %13 = vector.shape_cast %12 : vector<1x8x128xf32> to vector<8x128xf32>
    %14 = vector.shape_cast %11 : vector<8x128xf32> to vector<1x8x128xf32>
    tpu.vector_store %arg4[%c0_8, %c0_9, %c0_10], %14 {strides = array<i32>} : memref<1x8x128xf32, #tpu.memory_space<vmem>>, vector<1x8x128xf32>,
    return
  }
  func.func @transform_0(%arg0: i32) -> (i32, i32) {
    %c0_i32 = arith.constant 0 : i32
    %c0_i32_0 = arith.constant 0 : i32
    return %arg0, %c0_i32 : i32, i32
  }
  func.func @transform_1(%arg0: i32) -> (i32, i32) {
    %c0_i32 = arith.constant 0 : i32
    %c0_i32_0 = arith.constant 0 : i32
    %c0_i32_1 = arith.constant 0 : i32
    return %c0_i32, %c0_i32_0 : i32, i32
  }
  func.func @transform_2(%arg0: i32) -> (i32, i32) {
    %c0_i32 = arith.constant 0 : i32
    %c0_i32_0 = arith.constant 0 : i32
    return %arg0, %c0_i32 : i32, i32
  }
  func.func @transform_3(%arg0: i32) -> (i32, i32, i32) {
    %c0_i32 = arith.constant 0 : i32
    %c0_i32_0 = arith.constant 0 : i32
    %c0_i32_1 = arith.constant 0 : i32
    return %arg0, %c0_i32, %c0_i32_0 : i32, i32, i32
  }
}

</mosaic_0001>

<bundles_post_ra>
// kernel: tpu_custom_call.1
= control target key start
LH: loop header
LB: loop body
LE: loop exit
PB: predicated region body
PF: predicated region fallthrough
CT: control target
= control target key end

     0   :  { %9 = vsyncpa [#allocation3], 0  ;;  %s1296_s0 = inlined_call_operand.hbm [shape: f32[512,128], index: 0, kind: input, shape index: {}]   ;;  %s1297_s1 = inlined_call_operand.hbm [shape: bf16[128,128], index: 1, kind: input, shape index: {}]   ;;  %s1298_s2 = inlined_call_operand.hbm [shape: f32[512,128], index: 2, kind: output, shape index: {0}]   ;;  %s1299_s3 = inlined_call_operand.hbm [shape: f32[4,8,128], index: 3, kind: output, shape index: {1}]  }
   0x1   :  { %11 = vsyncpa [#allocation3 + $0x1], 0 }
   0x2   :  { %12 = vsyncpa [#allocation6], 0 }
   0x3   :  { %13 = vsyncpa [#allocation4], 0 }
   0x4   :  { %15 = vsyncpa [#allocation4 + $0x1], 0 }
   0x5   :  { %16 = vsyncpa [#allocation9], 0 }
   0x6   :  { %18 = vsyncpa [#allocation9 + $0x1], 0  ;;  %s990_s12 = smov 0   ;;  %s992_s13 = smov 0  }
   0x7   :  { %s994_s14 = smov 0   ;;  %s996_s15 = smov 0  }
   0x8 LB: > { %s1011_s16 = sadd.s32 4294967295, %s958_s15   ;;  %s629_s17 = sadd.s32 4294967294, %s958_s15   ;;  %s958_s15 = sphi %s996_s15, %s1318_s15   ;;  %s954_s14 = sphi %s994_s14, %s1317_s14   ;;  %s950_s13 = sphi %s992_s13, %s1316_s13   ;;  %s946_s12 = sphi %s990_s12, %s1315_s12  }
   0x9   : > { %p44_p0 = scmp.ne.s32.totalorder %s950_s13, %s946_s12  ;;  %p1300_p1 = scmp.eq.s32.totalorder %s1011_s16, 0 }
   0xa   : > { %p95_p3 = scmp.eq.s32.totalorder %s629_s17, 3  ;;  %p630_p5 = scmp.ge.s32.totalorder %s958_s15, 1 }
   0xb   : > { %p1020_p4 = por %p1300_p1, %p44_p0  ;;  %p128_p7 = scmp.lt.s32.totalorder %s958_s15, 5 }
   0xc   : > { %p1025_p6 = por %p95_p3, %p44_p0  ;;  %s960_s21 = smov [#allocation5]  }
   0xd   : > { %s1303_s18 = scalar_select %p1020_p4, 1, 0 }
   0xe   : > { %s1304_s19 = scalar_select %p1025_p6, 1, 0 }
   0xf   : > { %p1030_p8 = pnand %p630_p5, %p128_p7  ;;  %s140_s22 = sshll.u32 %s960_s21, 4  ;;  %s141_s22 = int_to_ptr.vmem [resolvable:$true] %s140_s22 }
  0x10   : > { %s1043_s24 = sadd.s32 1, %s958_s15   ;;  %s31_s25 = sadd.s32 1, %s954_s14 }
  0x11   : > { %s1305_s20 = scalar_select %p1030_p8, 1, 0 }
  0x12   : > { %p732_p9 = pneg %p1030_p8  ;;  %s28_s26 = ssub.s32 %s958_s15, %s1043_s24 }
  0x13   : > { %s798_s29 = scalar_lea.hbm %s1297_s1, 1024 }
  0x14   : > { %p1038_p10 = pnand %p732_p9, %p1300_p1  ;;  %p799_p11 = scmp.ne.s32.totalorder %s1297_s1, %s798_s29 }
  0x15   : > { %p805_p3 = scmp.lt.u32.totalorder %s798_s29, %s1297_s1 }
  0x16   : > { %p800_p12 = pneg %p1038_p10 }
  0x18   : > { %p801_p13 = pnand %p800_p12, %p799_p11 }
  0x1a   : > { %p802_p0 = pneg %p801_p13 }
  0x1c   : > { %p807_p5 = pnand %p805_p3, %p802_p0 }
  0x1e   : > { %810 = shalt.err (!%p807_p5)
}
  0x1f   : > { %s811_s7 = scalar_lea.vmem %s141_s22, 1024  ;;  %p819_p2 = scmp.lt.s32.totalorder %s141_s22, %s141_s22 }
  0x20   : > { %p812_p7 = scmp.ne.s32.totalorder %s141_s22, %s811_s7  ;;  %p820_p6 = scmp.lt.s32.totalorder %s811_s7, %s811_s7 }
  0x22   : > { %p814_p9 = pnand %p812_p7, %p800_p12  ;;  %p821_p4 = por %p820_p6, %p819_p2 }
  0x24   : > { %p815_p1 = pneg %p814_p9 }
  0x26   : > { %p822_p8 = pnand %p821_p4, %p815_p1 }
  0x28   : > { %825 = shalt.err (!%p822_p8)
}
  0x29   : > { %s961_s8 = smov 64   ;;  %s962_s9 = smov 4  }
  0x2a   : > { %735 = dma.hbm_to_vmem [thread:$0]  (!%p1038_p10), %s1297_s1, 1024, %s141_s22, [#allocation6], %s961_s8, %s961_s8, %s962_s9  }
  0x2b   : > { %p29_p11 = scmp.eq.s32.totalorder %s28_s26, 0  ;;  %p38_p2 = scmp.ne.s32.totalorder %s954_s14, %s950_s13 }
  0x2c   : > { %p39_p1 = scmp.eq.s32.totalorder %s958_s15, 0  ;;  %p748_p4 = scmp.lt.s32.totalorder %s958_s15, 4 }
  0x2d   : > { %s1069_s17 = scalar_select %p29_p11, %s954_s14, %s31_s25  }
  0x2e   : > { %p40_p6 = por %p39_p1, %p38_p2  ;;  %p1307_p8 = scmp.eq.s32.totalorder %s1011_s16, 3 }
  0x2f   : > { %s154_s27 = sand.u32 1, %s954_s14   ;;  %s656_s28 = sshll.u32 %s958_s15, 11 }
  0x30   : > { %p1073_p12 = por %p1307_p8, %p38_p2  ;;  %s633_s29 = sshll.u32 %s154_s27, 7 }
  0x31   : > { %s1082_s4 = scalar_lea.hbm %s1296_s0, %s656_s28  ;;  %s158_s22 = scalar_lea.vmem [#allocation2], %s633_s29 }
  0x32   : > { %s165_s25 = sshll.u32 %s158_s22, 4  ;;  %p1084_p10 = pnand %p748_p4, %p40_p6  ;;  %s1088_s25 = int_to_ptr.vmem [resolvable:$true] %s165_s25 }
  0x33   : > { %s1090_s5 = scalar_lea.sflag [#allocation3], %s154_s27  ;;  %s826_s6 = scalar_lea.hbm %s1082_s4, 2048 }
  0x34   : > { %p827_p13 = scmp.ne.s32.totalorder %s1082_s4, %s826_s6  ;;  %p828_p0 = pneg %p1084_p10 }
  0x35   : > { %s831_s9 = scalar_lea.hbm %s1296_s0, 8192  ;;  %p832_p7 = scmp.lt.u32.totalorder %s1082_s4, %s1296_s0 }
  0x36   : > { %p829_p3 = pnand %p828_p0, %p827_p13  ;;  %p833_p9 = scmp.lt.u32.totalorder %s831_s9, %s826_s6 }
  0x37   : > { %p835_p2 = scmp.lt.u32.totalorder %s826_s6, %s1082_s4 }
  0x38   : > { %p830_p5 = pneg %p829_p3  ;;  %p834_p11 = por %p833_p9, %p832_p7 }
  0x3a   : > { %p836_p1 = por %p835_p2, %p834_p11 }
  0x3c   : > { %p837_p4 = pnand %p836_p1, %p830_p5 }
  0x3e   : > { %840 = shalt.err (!%p837_p4)
}
  0x3f   : > { %s841_s27 = scalar_lea.vmem %s1088_s25, 2048  ;;  %s963_s28 = smov [#allocation2]  }
  0x40   : > { %p842_p6 = scmp.ne.s32.totalorder %s1088_s25, %s841_s27  ;;  %s846_s29 = sshll.u32 %s963_s28, 4  ;;  %s847_s29 = int_to_ptr.vmem [resolvable:$false] %s846_s29 }
  0x41   : > { %s848_s23 = scalar_lea.vmem %s847_s29, 4096  ;;  %p849_p3 = scmp.lt.s32.totalorder %s1088_s25, %s847_s29 }
  0x42   : > { %p844_p8 = pnand %p842_p6, %p828_p0  ;;  %p850_p7 = scmp.lt.s32.totalorder %s848_s23, %s841_s27 }
  0x44   : > { %p845_p13 = pneg %p844_p8  ;;  %p851_p9 = por %p850_p7, %p849_p3 }
  0x46   : > { %p852_p11 = pnand %p851_p9, %p845_p13 }
  0x48   : > { %855 = shalt.err (!%p852_p11)
}
  0x49   : > { %s964_s30 = smov 128   ;;  %s965_s22 = smov 8  }
  0x4a   : > { %739 = dma.hbm_to_vmem [thread:$0]  (!%p1084_p10), %s1082_s4, 2048, %s1088_s25, %s1090_s5, %s964_s30, %s964_s30, %s965_s22  }
  0x4b   : > { %p1310_p0 = scmp.ne.s32.totalorder %s1305_s20, 0 }
  0x4c   : > { %s1121_s6 = sand.u32 (!%p1310_p0), 1, %s950_s13   ;;  %p1311_p5 = scmp.ne.s32.totalorder (!%p1310_p0), %s1303_s18, 0 }
  0x4d   : > { %177 = sbr.rel (%p1310_p0) target bundleno = 407 (0x197), region = 28  ;;  %s637_s7 = sshll.u32 (!%p1310_p0), %s1121_s6, 7 }
  0x4e   : > { %s180_s8 = scalar_lea.sflag (!%p1310_p0), [#allocation3], %s1121_s6  ;;  %s1127_s9 = scalar_lea.vmem (!%p1310_p0), [#allocation2], %s637_s7 }
  0x54   : > { %929 = dma.done.wait (%p1311_p5), %s180_s8, 2048  }
  0x55   : > { %931 = vsyncadd (%p1311_p5), %s180_s8, 4294965248  ;;  %p1312_p10 = scmp.eq.s32.totalorder %s1011_s16, 0 }
  0x57   : > { %933 = dma.done.wait (%p1312_p10), [#allocation6], 1024   ;;  %p1313_p2 = pmov %p1312_p10 }
  0x58   : > { %v790_v0 = vld [vmem:[#allocation5] sm:$0xff]   ;;  %v791_v1 = vld [vmem:[#allocation5 + $0x8] sm:$0xff]   ;;  %v792_v2 = vld [vmem:[#allocation5 + $0x10] sm:$0xff]   ;;  %s1157_s18 = scalar_lea.vmem [#allocation7], %s637_s7  ;;  %s657_s20 = sshll.u32 %s1011_s16, 11 }
  0x59   : > { %935 = vsyncadd (%p1313_p2), [#allocation6], 4294966272  ;;  %674 = vmatprep.subr.bf16.mxu0 %v790_v0  ;;  %706 = vmatprep.subr.bf16.mxu1 %v790_v0  ;;  %v793_v3 = vld [vmem:[#allocation5 + $0x18] sm:$0xff]   ;;  %v218_v4 = vld [vmem:[%s1127_s9] sm:$0xff]  ;;  %s501_s4 = sshll.u32 %s1157_s18, 4  ;;  %s1189_s5 = scalar_lea.hbm %s1298_s2, %s657_s20  ;;  %s1191_s4 = int_to_ptr.vmem [resolvable:$true] %s501_s4 }
  0x5a   : > { %675 = vmatpush3.bf16.msra.mxu0 %v790_v0  ;;  %714 = vmatpush3.bf16.msra.mxu1 %v790_v0  ;;  %v219_v5 = vld [vmem:[%s1127_s9 + $0x8] sm:$0xff]  ;;  %v226_v7 = vld [vmem:[%s1127_s9 + $0x40] sm:$0xff]  ;;  %v796_v12 = vld [vmem:[#allocation5 + $0x30] sm:$0xff]   ;;  %s483_s10 = scalar_lea.sflag [#allocation4], %s1121_s6  ;;  %s856_s11 = scalar_lea.vmem %s1191_s4, 2048 }
  0x5b   : > { %676 = vmatprep.subr.bf16.mxu0 %v791_v1  ;;  %707 = vmatprep.subr.bf16.mxu1 %v791_v1  ;;  %v234_v6 = vpack.c.bf16 %v219_v5, %v218_v4  ;;  %v227_v8 = vld [vmem:[%s1127_s9 + $0x48] sm:$0xff]  ;;  %v794_v9 = vld [vmem:[#allocation5 + $0x20] sm:$0xff]   ;;  %v797_v13 = vld [vmem:[#allocation5 + $0x38] sm:$0xff]   ;;  %p857_p1 = scmp.ne.s32.totalorder %s1191_s4, %s856_s11  ;;  %s966_s27 = smov [#allocation7]  }
  0x5c   : > { %v238_v10 = vpack.c.bf16 %v227_v8, %v226_v7  ;;  %v795_v11 = vld [vmem:[#allocation5 + $0x28] sm:$0xff]   ;;  %v220_v14 = vld [vmem:[%s1127_s9 + $0x10] sm:$0xff]  ;;  %v221_v15 = vld [vmem:[%s1127_s9 + $0x18] sm:$0xff]  ;;  %s860_s28 = sshll.u32 %s966_s27, 4  ;;  %s861_s28 = int_to_ptr.vmem [resolvable:$false] %s860_s28 }
  0x5d   : > { %690 = vmatprep.mubr.bf16.mxu0 %v234_v6  ;;  %v222_v16 = vld [vmem:[%s1127_s9 + $0x20] sm:$0xff]  ;;  %v228_v17 = vld [vmem:[%s1127_s9 + $0x50] sm:$0xff]  ;;  %v229_v18 = vld [vmem:[%s1127_s9 + $0x58] sm:$0xff]  ;;  %v235_v22 = vpack.c.bf16 %v221_v15, %v220_v14  ;;  %p858_p4 = pnand %p857_p1, %p1073_p12  ;;  %s862_s29 = scalar_lea.vmem %s861_s28, 4096 }
  0x5e   : > { %677 = vmatpush3.bf16.msra.mxu0 %v791_v1  ;;  %715 = vmatpush3.bf16.msra.mxu1 %v791_v1  ;;  %v223_v19 = vld [vmem:[%s1127_s9 + $0x28] sm:$0xff]  ;;  %v230_v20 = vld [vmem:[%s1127_s9 + $0x60] sm:$0xff]  ;;  %v239_v23 = vpack.c.bf16 %v229_v18, %v228_v17  ;;  %v224_v26 = vld [vmem:[%s1127_s9 + $0x30] sm:$0xff]  ;;  %p863_p8 = scmp.lt.s32.totalorder %s1191_s4, %s861_s28  ;;  %p864_p13 = scmp.lt.s32.totalorder %s862_s29, %s856_s11 }
  0x5f   : > { %678 = vmatprep.subr.bf16.mxu0 %v792_v2  ;;  %708 = vmatprep.subr.bf16.mxu1 %v792_v2  ;;  %v231_v21 = vld [vmem:[%s1127_s9 + $0x68] sm:$0xff]  ;;  %v236_v24 = vpack.c.bf16 %v223_v19, %v222_v16  ;;  %v225_v27 = vld [vmem:[%s1127_s9 + $0x38] sm:$0xff]  ;;  %v232_v28 = vld [vmem:[%s1127_s9 + $0x70] sm:$0xff]  ;;  %p859_p6 = pneg %p858_p4 }
  0x60   : > { %698 = vmatprep.mubr.bf16.mxu1 %v238_v10  ;;  %v240_v25 = vpack.c.bf16 %v231_v21, %v230_v20  ;;  %v233_v29 = vld [vmem:[%s1127_s9 + $0x78] sm:$0xff]  ;;  %v237_v30 = vpack.c.bf16 %v225_v27, %v224_v26  ;;  %p865_p3 = por %p864_p13, %p863_p8 }
  0x61   : > { %v241_v31 = vpack.c.bf16 %v233_v29, %v232_v28 }
  0x62   : > { %679 = vmatpush3.bf16.msra.mxu0 %v792_v2  ;;  %716 = vmatpush3.bf16.msra.mxu1 %v792_v2  ;;  %p866_p7 = pnand %p865_p3, %p859_p6 }
  0x63   : > { %680 = vmatprep.subr.bf16.mxu0 %v793_v3  ;;  %709 = vmatprep.subr.bf16.mxu1 %v793_v3 }
  0x66   : > { %681 = vmatpush3.bf16.msra.mxu0 %v793_v3  ;;  %717 = vmatpush3.bf16.msra.mxu1 %v793_v3 }
  0x67   : > { %682 = vmatprep.subr.bf16.mxu0 %v794_v9  ;;  %710 = vmatprep.subr.bf16.mxu1 %v794_v9 }
  0x6a   : > { %683 = vmatpush3.bf16.msra.mxu0 %v794_v9  ;;  %718 = vmatpush3.bf16.msra.mxu1 %v794_v9 }
  0x6b   : > { %684 = vmatprep.subr.bf16.mxu0 %v795_v11  ;;  %711 = vmatprep.subr.bf16.mxu1 %v795_v11 }
  0x6e   : > { %685 = vmatpush3.bf16.msra.mxu0 %v795_v11  ;;  %719 = vmatpush3.bf16.msra.mxu1 %v795_v11 }
  0x6f   : > { %686 = vmatprep.subr.bf16.mxu0 %v796_v12  ;;  %712 = vmatprep.subr.bf16.mxu1 %v796_v12 }
  0x72   : > { %687 = vmatpush3.bf16.msra.mxu0 %v796_v12  ;;  %720 = vmatpush3.bf16.msra.mxu1 %v796_v12 }
  0x73   : > { %688 = vmatprep.subr.bf16.mxu0 %v797_v13  ;;  %713 = vmatprep.subr.bf16.mxu1 %v797_v13 }
  0x76   : > { %689 = vmatpush3.bf16.msra.mxu0 %v797_v13  ;;  %721 = vmatpush3.bf16.msra.mxu1 %v797_v13 }
  0x79   : > { %691 = vmatmul.mubr.bf16.vlgmr.msra.gmra.mrb[0].mxu0 %v235_v22  ;;  %699 = vmatmul.mubr.bf16.vlgmr.msra.gmra.mrb[0].mxu1 %v239_v23 }
  0x7a   : > { %694 = vmatprep.mubr.bf16.mxu0 %v236_v24  ;;  %702 = vmatprep.mubr.bf16.mxu1 %v240_v25 }
  0x81   : > { %695 = vmatmul.mubr.bf16.gmra.mrb[4].mxu0 %v237_v30  ;;  %703 = vmatmul.mubr.bf16.gmra.mrb[4].mxu1 %v241_v31 }
 0x14c   : > { %v692_v32 = vpop.f32.mrb[0].mxu0  ;;  %v1153_v33 = vpop.f32.mrb[0].mxu1 }
 0x14d   : > { %405 = vst [vmem:[%s1157_s18 + $0x10] sm:$0xff] %v692_v32  ;;  %v340_v34 = vpop.f32.mrb[1].mxu0  ;;  %413 = vst [vmem:[%s1157_s18 + $0x50] sm:$0xff] %v1153_v33  ;;  %v1162_v35 = vpop.f32.mrb[1].mxu1  ;;  %v442_v43 = vmul.f32 %v692_v32, %v692_v32 }
 0x14e   : > { %403 = vst [vmem:[%s1157_s18] sm:$0xff] %v340_v34  ;;  %v693_v36 = vpop.f32.mrb[2].mxu0  ;;  %411 = vst [vmem:[%s1157_s18 + $0x40] sm:$0xff] %v1162_v35  ;;  %v1167_v37 = vpop.f32.mrb[2].mxu1  ;;  %v440_v40 = vmul.f32 %v340_v34, %v340_v34 }
 0x14f   : > { %406 = vst [vmem:[%s1157_s18 + $0x18] sm:$0xff] %v693_v36  ;;  %v343_v38 = vpop.f32.mrb[3].mxu0  ;;  %414 = vst [vmem:[%s1157_s18 + $0x58] sm:$0xff] %v1167_v37  ;;  %v1172_v39 = vpop.f32.mrb[3].mxu1  ;;  %v443_v46 = vmul.f32 %v693_v36, %v693_v36 }
 0x150   : > { %404 = vst [vmem:[%s1157_s18 + $0x8] sm:$0xff] %v343_v38  ;;  %v419_v41 = vadd.f32 %v343_v38, %v340_v34  ;;  %v441_v42 = vmul.f32 %v343_v38, %v343_v38  ;;  %412 = vst [vmem:[%s1157_s18 + $0x48] sm:$0xff] %v1172_v39 }
 0x152   : > { %v420_v44 = vadd.f32 %v692_v32, %v419_v41  ;;  %v456_v45 = vadd.f32 %v441_v42, %v440_v40 }
 0x154   : > { %v457_v47 = vadd.f32 %v456_v45, %v442_v43  ;;  %v696_v48 = vpop.f32.mrb[4].mxu0  ;;  %v421_v49 = vadd.f32 %v693_v36, %v420_v44  ;;  %v1179_v50 = vpop.f32.mrb[4].mxu1 }
 0x155   : > { %409 = vst [vmem:[%s1157_s18 + $0x30] sm:$0xff] %v696_v48  ;;  %v356_v51 = vpop.f32.mrb[5].mxu0  ;;  %417 = vst [vmem:[%s1157_s18 + $0x70] sm:$0xff] %v1179_v50  ;;  %v1184_v52 = vpop.f32.mrb[5].mxu1 }
 0x156   : > { %407 = vst [vmem:[%s1157_s18 + $0x20] sm:$0xff] %v356_v51  ;;  %v422_v53 = vadd.f32 %v421_v49, %v356_v51  ;;  %v444_v54 = vmul.f32 %v356_v51, %v356_v51  ;;  %v458_v55 = vadd.f32 %v457_v47, %v443_v46  ;;  %v697_v56 = vpop.f32.mrb[6].mxu0  ;;  %415 = vst [vmem:[%s1157_s18 + $0x60] sm:$0xff] %v1184_v52  ;;  %v1196_v57 = vpop.f32.mrb[6].mxu1 }
 0x157   : > { %410 = vst [vmem:[%s1157_s18 + $0x38] sm:$0xff] %v697_v56  ;;  %v359_v58 = vpop.f32.mrb[7].mxu0  ;;  %418 = vst [vmem:[%s1157_s18 + $0x78] sm:$0xff] %v1196_v57  ;;  %v391_v59 = vpop.f32.mrb[7].mxu1 }
 0x158   : > { %v459_v60 = vadd.f32 %v458_v55, %v444_v54  ;;  %408 = vst [vmem:[%s1157_s18 + $0x28] sm:$0xff] %v359_v58  ;;  %v423_v61 = vadd.f32 %v422_v53, %v359_v58  ;;  %v445_v62 = vmul.f32 %v359_v58, %v359_v58  ;;  %416 = vst [vmem:[%s1157_s18 + $0x68] sm:$0xff] %v391_v59 }
 0x159   : > { %869 = shalt.err (!%p866_p7)
}
 0x15a   : > { %s870_s23 = scalar_lea.hbm %s1189_s5, 2048  ;;  %s874_s7 = scalar_lea.hbm %s1298_s2, 8192 }
 0x15b   : > { %p871_p9 = scmp.ne.s32.totalorder %s1189_s5, %s870_s23  ;;  %p875_p5 = scmp.lt.u32.totalorder %s1189_s5, %s1298_s2 }
 0x15c   : > { %p876_p10 = scmp.lt.u32.totalorder %s874_s7, %s870_s23  ;;  %p878_p1 = scmp.lt.u32.totalorder %s870_s23, %s1189_s5 }
 0x15d   : > { %p872_p11 = pnand %p871_p9, %p1073_p12 }
 0x15e   : > { %p877_p2 = por %p876_p10, %p875_p5 }
 0x15f   : > { %p873_p0 = pneg %p872_p11 }
 0x160   : > { %p879_p4 = por %p878_p1, %p877_p2 }
 0x162   : > { %p880_p6 = pnand %p879_p4, %p873_p0 }
 0x164   : > { %883 = shalt.err (!%p880_p6)
}
 0x165   : > { %s967_s18 = smov 128   ;;  %s968_s20 = smov 8   ;;  %v446_v63 = vmul.f32 %v696_v48, %v696_v48  ;;  %v424_v0 = vadd.f32 %v696_v48, %v423_v61  ;;  %v460_v1 = vadd.f32 %v459_v60, %v445_v62  ;;  %v447_v2 = vmul.f32 %v697_v56, %v697_v56 }
 0x166   : > { %728 = dma.vmem_to_hbm [thread:$0]  (%p1073_p12), %s1191_s4, 2048, %s1189_s5, %s483_s10, %s967_s18, %s967_s18, %s968_s20   ;;  %v448_v5 = vmul.f32 %v1162_v35, %v1162_v35  ;;  %v449_v10 = vmul.f32 %v1172_v39, %v1172_v39  ;;  %v450_v11 = vmul.f32 %v1153_v33, %v1153_v33  ;;  %v451_v14 = vmul.f32 %v1167_v37, %v1167_v37 }
 0x167   : > { %v461_v3 = vadd.f32 %v460_v1, %v446_v63  ;;  %v425_v4 = vadd.f32 %v697_v56, %v424_v0  ;;  %v452_v17 = vmul.f32 %v1184_v52, %v1184_v52  ;;  %v453_v22 = vmul.f32 %v391_v59, %v391_v59  ;;  %s640_s4 = sshll.u32 %s1121_s6, 3  ;;  %s653_s25 = sshll.u32 %s1011_s16, 7 }
 0x168   : > { %v454_v23 = vmul.f32 %v1179_v50, %v1179_v50  ;;  %v455_v26 = vmul.f32 %v1196_v57, %v1196_v57  ;;  %vm477_vm0 = vcmask 1040384   ;;  %s214_s26 = scalar_lea.vmem [#allocation8], %s640_s4  ;;  %vm479_vm1 = vcmask 1041408   ;;  %s1253_s27 = scalar_lea.hbm %s1299_s3, %s653_s25 }
 0x169   : > { %v426_v6 = vadd.f32 %v425_v4, %v1162_v35  ;;  %v462_v7 = vadd.f32 %v461_v3, %v447_v2  ;;  %s517_s5 = sshll.u32 %s214_s26, 4  ;;  %s488_s28 = scalar_lea.sflag [#allocation9], %s1121_s6  ;;  %s1255_s5 = int_to_ptr.vmem [resolvable:$true] %s517_s5 }
 0x16a   : > { %s884_s16 = scalar_lea.vmem %s1255_s5, 128  ;;  %s969_s29 = smov [#allocation8]  }
 0x16b   : > { %v463_v8 = vadd.f32 %v462_v7, %v448_v5  ;;  %v427_v9 = vadd.f32 %v426_v6, %v1172_v39  ;;  %p885_p8 = scmp.ne.s32.totalorder %s1255_s5, %s884_s16  ;;  %s888_s23 = sshll.u32 %s969_s29, 4  ;;  %s889_s23 = int_to_ptr.vmem [resolvable:$false] %s888_s23 }
 0x16c   : > { %s890_s30 = scalar_lea.vmem %s889_s23, 256  ;;  %p891_p7 = scmp.lt.s32.totalorder %s1255_s5, %s889_s23 }
 0x16d   : > { %v428_v12 = vadd.f32 %v1153_v33, %v427_v9  ;;  %v464_v13 = vadd.f32 %v463_v8, %v449_v10  ;;  %p886_p13 = pnand %p885_p8, %p1073_p12  ;;  %p892_p9 = scmp.lt.s32.totalorder %s890_s30, %s884_s16 }
 0x16f   : > { %v465_v15 = vadd.f32 %v464_v13, %v450_v11  ;;  %v429_v16 = vadd.f32 %v1167_v37, %v428_v12  ;;  %p887_p3 = pneg %p886_p13  ;;  %p893_p11 = por %p892_p9, %p891_p7 }
 0x171   : > { %v430_v18 = vadd.f32 %v429_v16, %v1184_v52  ;;  %v466_v19 = vadd.f32 %v465_v15, %v451_v14  ;;  %p894_p0 = pnand %p893_p11, %p887_p3 }
 0x173   : > { %v467_v20 = vadd.f32 %v466_v19, %v452_v17  ;;  %v431_v21 = vadd.f32 %v430_v18, %v391_v59 }
 0x175   : > { %v432_v24 = vadd.f32 %v1179_v50, %v431_v21  ;;  %v468_v25 = vadd.f32 %v467_v20, %v453_v22 }
 0x177   : > { %v433_v27 = vadd.f32 %v1196_v57, %v432_v24  ;;  %v469_v28 = vadd.f32 %v468_v25, %v454_v23 }
 0x179   : > { %v434_v29 = vrot.slane %v433_v27, 4  ;;  %v470_v30 = vadd.f32 %v469_v28, %v455_v26 }
 0x17b   : > { %v435_v31 = vadd.f32 %v434_v29, %v433_v27  ;;  %v471_v32 = vrot.slane %v470_v30, 4 }
 0x17d   : > { %v436_v33 = vrot.slane %v435_v31, 2  ;;  %v472_v34 = vadd.f32 %v471_v32, %v470_v30 }
 0x17f   : > { %v437_v35 = vadd.f32 %v436_v33, %v435_v31  ;;  %v473_v36 = vrot.slane %v472_v34, 2 }
 0x181   : > { %v438_v37 = vrot.slane %v437_v35, 1  ;;  %v474_v38 = vadd.f32 %v473_v36, %v472_v34 }
 0x183   : > { %v475_v39 = vrot.slane %v474_v38, 1  ;;  %v439_v40 = vadd.f32 %v438_v37, %v437_v35 }
 0x185   : > { %v476_v41 = vadd.f32 %v475_v39, %v474_v38 }
 0x187   : > { %v478_v42 = vsel %vm477_vm0, %v439_v40, %v476_v41 }
 0x188   : > { %v480_v43 = vsel %vm479_vm1, %v478_v42, 0.0 }
 0x189   : > { %481 = vst [vmem:[%s214_s26] sm:$0xff] %v480_v43 }
 0x18a   : > { %897 = shalt.err (!%p894_p0)
}
 0x18b   : > { %s898_s6 = scalar_lea.hbm %s1253_s27, 128  ;;  %s902_s8 = scalar_lea.hbm %s1299_s3, 512 }
 0x18c   : > { %p899_p5 = scmp.ne.s32.totalorder %s1253_s27, %s898_s6  ;;  %p903_p1 = scmp.lt.u32.totalorder %s1253_s27, %s1299_s3 }
 0x18d   : > { %p904_p4 = scmp.lt.u32.totalorder %s902_s8, %s898_s6  ;;  %p906_p8 = scmp.lt.u32.totalorder %s898_s6, %s1253_s27 }
 0x18e   : > { %p900_p10 = pnand %p899_p5, %p1073_p12 }
 0x18f   : > { %p905_p6 = por %p904_p4, %p903_p1 }
 0x190   : > { %p901_p2 = pneg %p900_p10 }
 0x191   : > { %p907_p13 = por %p906_p8, %p905_p6 }
 0x193   : > { %p908_p3 = pnand %p907_p13, %p901_p2 }
 0x195   : > { %911 = shalt.err (!%p908_p3)
}
 0x196   : > { %729 = dma.vmem_to_hbm [thread:$0]  (%p1073_p12), %s1255_s5, 128, %s1253_s27, %s488_s28  }
 0x197 PF: > { %p750_p7 = scmp.ge.s32.totalorder %s958_s15, 2  ;;  %s529_s20 = sand.u32 1, %s946_s12  }
 0x198   : > { %p1314_p9 = scmp.ne.s32.totalorder %s1304_s19, 0  ;;  %s530_s4 = scalar_lea.sflag [#allocation4], %s529_s20 }
 0x19a   : > { %p741_p11 = pnand %p750_p7, %p1314_p9 }
 0x19c   : > { %937 = dma.done.wait (!%p741_p11), %s530_s4, 2048  }
 0x19d   : > { %939 = vsyncadd (!%p741_p11), %s530_s4, 4294965248  ;;  %s539_s25 = scalar_lea.sflag [#allocation9], %s529_s20 }
 0x19e   : > { %941 = dma.done.wait (!%p741_p11), %s539_s25, 128  }
 0x19f   : > { %943 = vsyncadd (!%p741_p11), %s539_s25, 4294967168  ;;  %p21_p12 = scmp.ge.s32.totalorder %s1043_s24, 6   ;;  %s1315_s12 = smov %s950_s13 }
 0x1a0   : > { %s1316_s13 = smov %s954_s14  ;;  %s1317_s14 = smov %s1069_s17 }
 0x1a1   : > { %s1318_s15 = smov %s1043_s24  ;;  %23 = sbr.rel (!%p21_p12) target bundleno = 8 (0x8), region = 94 }
 0x1a8   :  { %544 = vsyncpa [#allocation3], 1 }
 0x1a9   :  { %546 = vsyncpa [#allocation3 + $0x1], 1 }
 0x1aa   :  { %547 = vsyncpa [#allocation6], 1 }
 0x1ab   :  { %548 = vsyncpa [#allocation4], 1 }
 0x1ac   :  { %550 = vsyncpa [#allocation4 + $0x1], 1 }
 0x1ad   :  { %551 = vsyncpa [#allocation9], 1 }
 0x1ae   :  { %553 = vsyncpa [#allocation9 + $0x1], 1 }

</bundles_post_ra>
